<compile_context>
chip_gen: v5e
topology: v5e:2x2
jax: 0.10.0
libtpu: 0.0.40
codegen_flags: <defaults>
</compile_context>

<pallas_src>
import numpy as np
import jax
import jax.numpy as jnp
from jax.experimental import pallas as pl
from jax.experimental.pallas import tpu as pltpu

HIDDEN = 256
LANE = 128
SUBLANE_BF16 = 16   # bf16 packs 16 rows per vreg sublane tile


def _round_up(n, m):
    return ((n + m - 1) // m) * m


def _cdiv(a, b):
    return -(-a // b)


# ----------------------------------------------------------------------------
# Kernel: whole 3-layer MLP hot path (bf16 matmuls, f32 accumulate/epilogue).
# ----------------------------------------------------------------------------
def actor_kernel(x_ref, w1_ref, b1_ref, w2_ref, b2_ref, wmu_ref, bmu_ref,
                 scale_ref, bias_ref, o_ref):
    # fc1 + relu   (bf16 x bf16 -> f32 accumulate on the MXU)
    h1 = jnp.dot(x_ref[...], w1_ref[...], preferred_element_type=jnp.float32)
    h1 = jnp.maximum(h1 + b1_ref[...], 0.0)
    # fc2 + relu
    h2 = jnp.dot(h1.astype(jnp.bfloat16), w2_ref[...],
                 preferred_element_type=jnp.float32)
    h2 = jnp.maximum(h2 + b2_ref[...], 0.0)
    # fc_mu + tanh  (tanh in f32 -> EUP slot, effectively free)
    mu = jnp.dot(h2.astype(jnp.bfloat16), wmu_ref[...],
                 preferred_element_type=jnp.float32)
    mu = jnp.tanh(mu + bmu_ref[...])
    # action rescale; lane-dense (TM, 128) f32 store
    o_ref[...] = mu * scale_ref[...] + bias_ref[...]


# ----------------------------------------------------------------------------
# Wrapper
# ----------------------------------------------------------------------------
def _choose_tiling(B, batch_tile):
    """Pick (TM, n_steps, B_pad).  Even n_steps for v7x's two TensorCores."""
    if B <= batch_tile:
        TM = max(SUBLANE_BF16, _round_up(B, SUBLANE_BF16))
        n_steps = 1
    else:
        n_steps = _cdiv(B, batch_tile)
        if n_steps % 2:                      # balance across 2 TCs (v7x)
            n_steps += 1
        TM = _round_up(_cdiv(B, n_steps), SUBLANE_BF16)
    return TM, n_steps, n_steps * TM


def actor_forward(obs, params, *, batch_tile=512):
    """obs: (B, *obs_shape) float32 -> (B, act_dim) float32."""
    B = obs.shape[0]
    # flatten(1, -1) glue + bf16 cast (halves the input DMA stream).
    x = obs.reshape(B, -1).astype(jnp.bfloat16)
    obs_dim = x.shape[1]
    obs_pad = params["w1"].shape[0]                 # lane-padded contraction dim
    act_dim = params["act_dim"]
    act_pad = params["w_mu"].shape[1]               # lane-padded (multiple of 128)

    if obs_pad != obs_dim:
        x = jnp.pad(x, ((0, 0), (0, obs_pad - obs_dim)))

    TM, n_steps, B_pad = _choose_tiling(B, batch_tile)
    if B_pad != B:
        x = jnp.pad(x, ((0, B_pad - B), (0, 0)))

    args = (x, params["w1"], params["b1"], params["w2"], params["b2"],
            params["w_mu"], params["b_mu"], params["action_scale"],
            params["action_bias"])

    def resident(a):
        # Full-array block, same block index every grid step -> DMA'd once,
        # stays VMEM-resident across all batch tiles.
        return pl.BlockSpec(a.shape, lambda i: (0, 0))

    out_pad = pl.pallas_call(
        actor_kernel,
        out_shape=jax.ShapeDtypeStruct((B_pad, act_pad), jnp.float32),
        grid_spec=pltpu.PrefetchScalarGridSpec(
            num_scalar_prefetch=0,
            grid=(n_steps,),
            in_specs=[pl.BlockSpec((TM, obs_pad), lambda i: (i, 0))]
                     + [resident(a) for a in args[1:]],
            out_specs=pl.BlockSpec((TM, act_pad), lambda i: (i, 0)),
        ),
        compiler_params=pltpu.CompilerParams(
            # Batch tiles are independent -> shard across both TCs on v7x.
            dimension_semantics=("parallel",)),
    )(*args)

    return out_pad[:B, :act_dim]


# ----------------------------------------------------------------------------
# Deterministic parameter init (mimics torch.nn.Linear default U(-1/sqrt(in), +)).
# Weights are stored bf16 (HBM traffic + native MXU path); biases / affine
# params stay f32.  w1 rows are lane-padded to a multiple of 128 (contraction
# dim); fc_mu-side params are lane-padded to 128 for a dense output store.
# ----------------------------------------------------------------------------
def init_params(key, obs_dim, act_dim, action_low, action_high, hidden=HIDDEN):
    ks = jax.random.split(key, 6)

    def linear(kw, kb, fan_in, fan_out):
        bound = 1.0 / np.sqrt(fan_in)
        w = jax.random.uniform(kw, (fan_in, fan_out), jnp.float32, -bound, bound)
        b = jax.random.uniform(kb, (1, fan_out), jnp.float32, -bound, bound)
        return w, b

    w1, b1 = linear(ks[0], ks[1], obs_dim, hidden)
    w2, b2 = linear(ks[2], ks[3], hidden, hidden)
    w_mu, b_mu = linear(ks[4], ks[5], hidden, act_dim)

    obs_pad = _round_up(max(obs_dim, LANE), LANE)
    w1_p = jnp.pad(w1, ((0, obs_pad - obs_dim), (0, 0)))

    act_pad = _round_up(max(act_dim, LANE), LANE)
    pad = act_pad - act_dim
    w_mu_p = jnp.pad(w_mu, ((0, 0), (0, pad)))
    b_mu_p = jnp.pad(b_mu, ((0, 0), (0, pad)))

    action_scale = ((action_high - action_low) / 2.0).reshape(1, act_dim).astype(np.float32)
    action_bias = ((action_high + action_low) / 2.0).reshape(1, act_dim).astype(np.float32)
    scale_p = jnp.pad(jnp.asarray(action_scale), ((0, 0), (0, pad)))
    bias_p = jnp.pad(jnp.asarray(action_bias), ((0, 0), (0, pad)))

    return {
        "act_dim": act_dim,
        "w1": w1_p.astype(jnp.bfloat16),
        "w2": w2.astype(jnp.bfloat16),
        "w_mu": w_mu_p.astype(jnp.bfloat16),
        "b1": b1, "b2": b2, "b_mu": b_mu_p,
        "action_scale": scale_p, "action_bias": bias_p,
    }


# ----------------------------------------------------------------------------
# Pure-JAX reference (same bf16 weight/activation rounding, f32 accumulation).
# ----------------------------------------------------------------------------
def actor_reference(obs, p):
    x = obs.reshape(obs.shape[0], -1).astype(jnp.bfloat16)
    obs_pad = p["w1"].shape[0]
    if x.shape[1] != obs_pad:
        x = jnp.pad(x, ((0, 0), (0, obs_pad - x.shape[1])))
    act_dim = p["act_dim"]
    h1 = jax.nn.relu(
        jnp.dot(x, p["w1"], preferred_element_type=jnp.float32) + p["b1"])
    h2 = jax.nn.relu(
        jnp.dot(h1.astype(jnp.bfloat16), p["w2"],
                preferred_element_type=jnp.float32) + p["b2"])
    mu = jnp.tanh(
        jnp.dot(h2.astype(jnp.bfloat16), p["w_mu"],
                preferred_element_type=jnp.float32) + p["b_mu"])
    out = mu * p["action_scale"] + p["action_bias"]
    return out[:, :act_dim]


if __name__ == "__main__":
    # Small synthetic env: observation space shape (4, 16) -> flattened 64,
    # action space shape (8,), bounds [-2, 2].
    B = 2
    obs_shape = (4, 16)
    obs_dim = int(np.prod(obs_shape))
    act_dim = 8
    action_low = np.full((act_dim,), -2.0, dtype=np.float32)
    action_high = np.full((act_dim,), 2.0, dtype=np.float32)

    key = jax.random.PRNGKey(0)
    k_x, k_p = jax.random.split(key)

    obs = jax.random.normal(k_x, (B,) + obs_shape, dtype=jnp.float32)
    params = init_params(k_p, obs_dim, act_dim, action_low, action_high)

    out = jax.block_until_ready(actor_forward(obs, params))

    ref = actor_reference(obs, params)
    np.testing.assert_allclose(np.asarray(out), np.asarray(ref),
                               rtol=1e-2, atol=1e-2)

    print("KERNEL_OK")
</pallas_src>

<mosaic_0001>
module attributes {stable_mosaic.version = 11 : i64} {
  func.func @actor_kernel(%arg0: i32, %arg1: memref<16x128xbf16, #tpu.memory_space<vmem>>, %arg2: memref<128x256xbf16, #tpu.memory_space<vmem>>, %arg3: memref<1x256xf32, #tpu.memory_space<vmem>>, %arg4: memref<256x256xbf16, #tpu.memory_space<vmem>>, %arg5: memref<1x256xf32, #tpu.memory_space<vmem>>, %arg6: memref<256x128xbf16, #tpu.memory_space<vmem>>, %arg7: memref<1x128xf32, #tpu.memory_space<vmem>>, %arg8: memref<1x128xf32, #tpu.memory_space<vmem>>, %arg9: memref<1x128xf32, #tpu.memory_space<vmem>>, %arg10: memref<16x128xf32, #tpu.memory_space<vmem>>) attributes {dimension_semantics = [#tpu.dimension_semantics<parallel>], iteration_bounds = array<i64: 1>, scalar_prefetch = 0 : i64, scratch_operands = 0 : i64, tpu.core_type = #tpu.core_type<tc>, window_params = [{transform_indices = @transform_0, window_bounds = array<i64: 16, 128>}, {pipeline_mode = #tpu.pipeline_mode<synchronous>, transform_indices = @transform_1, window_bounds = array<i64: 128, 256>}, {pipeline_mode = #tpu.pipeline_mode<synchronous>, transform_indices = @transform_2, window_bounds = array<i64: 1, 256>}, {pipeline_mode = #tpu.pipeline_mode<synchronous>, transform_indices = @transform_3, window_bounds = array<i64: 256, 256>}, {pipeline_mode = #tpu.pipeline_mode<synchronous>, transform_indices = @transform_4, window_bounds = array<i64: 1, 256>}, {pipeline_mode = #tpu.pipeline_mode<synchronous>, transform_indices = @transform_5, window_bounds = array<i64: 256, 128>}, {pipeline_mode = #tpu.pipeline_mode<synchronous>, transform_indices = @transform_6, window_bounds = array<i64: 1, 128>}, {pipeline_mode = #tpu.pipeline_mode<synchronous>, transform_indices = @transform_7, window_bounds = array<i64: 1, 128>}, {pipeline_mode = #tpu.pipeline_mode<synchronous>, transform_indices = @transform_8, window_bounds = array<i64: 1, 128>}, {transform_indices = @transform_9, window_bounds = array<i64: 16, 128>}]} {
    %c0 = arith.constant 0 : index
    %c0_0 = arith.constant 0 : index
    %0 = vector.load %arg1[%c0, %c0_0] : memref<16x128xbf16, #tpu.memory_space<vmem>>, vector<16x128xbf16>
    %c0_1 = arith.constant 0 : index
    %c0_2 = arith.constant 0 : index
    %1 = vector.load %arg2[%c0_1, %c0_2] : memref<128x256xbf16, #tpu.memory_space<vmem>>, vector<128x256xbf16>
    %cst = arith.constant dense<0.000000e+00> : vector<16x256xf32>
    %2 = tpu.matmul %0, %1, %cst {dimension_numbers = #tpu.dot_dimension_numbers<[1], [0], [0], [1], [0, 0, 1, 1], [], []>} : vector<16x128xbf16>, vector<128x256xbf16>, vector<16x256xf32> -> vector<16x256xf32>
    %c0_3 = arith.constant 0 : index
    %c0_4 = arith.constant 0 : index
    %3 = vector.load %arg3[%c0_3, %c0_4] : memref<1x256xf32, #tpu.memory_space<vmem>>, vector<1x256xf32>
    %4 = vector.broadcast %3 : vector<1x256xf32> to vector<16x256xf32>
    %5 = arith.addf %2, %4 : vector<16x256xf32>
    %cst_5 = arith.constant 0.000000e+00 : f32
    %6 = vector.broadcast %cst_5 : f32 to vector<16x256xf32>
    %7 = arith.maximumf %5, %6 : vector<16x256xf32>
    %8 = arith.truncf %7 : vector<16x256xf32> to vector<16x256xbf16>
    %c0_6 = arith.constant 0 : index
    %c0_7 = arith.constant 0 : index
    %9 = vector.load %arg4[%c0_6, %c0_7] : memref<256x256xbf16, #tpu.memory_space<vmem>>, vector<256x256xbf16>
    %cst_8 = arith.constant dense<0.000000e+00> : vector<16x256xf32>
    %10 = tpu.matmul %8, %9, %cst_8 {dimension_numbers = #tpu.dot_dimension_numbers<[1], [0], [0], [1], [0, 0, 1, 1], [], []>} : vector<16x256xbf16>, vector<256x256xbf16>, vector<16x256xf32> -> vector<16x256xf32>
    %c0_9 = arith.constant 0 : index
    %c0_10 = arith.constant 0 : index
    %11 = vector.load %arg5[%c0_9, %c0_10] : memref<1x256xf32, #tpu.memory_space<vmem>>, vector<1x256xf32>
    %12 = vector.broadcast %11 : vector<1x256xf32> to vector<16x256xf32>
    %13 = arith.addf %10, %12 : vector<16x256xf32>
    %cst_11 = arith.constant 0.000000e+00 : f32
    %14 = vector.broadcast %cst_11 : f32 to vector<16x256xf32>
    %15 = arith.maximumf %13, %14 : vector<16x256xf32>
    %16 = arith.truncf %15 : vector<16x256xf32> to vector<16x256xbf16>
    %c0_12 = arith.constant 0 : index
    %c0_13 = arith.constant 0 : index
    %17 = vector.load %arg6[%c0_12, %c0_13] : memref<256x128xbf16, #tpu.memory_space<vmem>>, vector<256x128xbf16>
    %cst_14 = arith.constant dense<0.000000e+00> : vector<16x128xf32>
    %18 = tpu.matmul %16, %17, %cst_14 {dimension_numbers = #tpu.dot_dimension_numbers<[1], [0], [0], [1], [0, 0, 1, 1], [], []>} : vector<16x256xbf16>, vector<256x128xbf16>, vector<16x128xf32> -> vector<16x128xf32>
    %c0_15 = arith.constant 0 : index
    %c0_16 = arith.constant 0 : index
    %19 = vector.load %arg7[%c0_15, %c0_16] : memref<1x128xf32, #tpu.memory_space<vmem>>, vector<1x128xf32>
    %20 = vector.broadcast %19 : vector<1x128xf32> to vector<16x128xf32>
    %21 = arith.addf %18, %20 : vector<16x128xf32>
    %22 = math.tanh %21 : vector<16x128xf32>
    %c0_17 = arith.constant 0 : index
    %c0_18 = arith.constant 0 : index
    %23 = vector.load %arg8[%c0_17, %c0_18] : memref<1x128xf32, #tpu.memory_space<vmem>>, vector<1x128xf32>
    %24 = vector.broadcast %23 : vector<1x128xf32> to vector<16x128xf32>
    %25 = arith.mulf %22, %24 : vector<16x128xf32>
    %c0_19 = arith.constant 0 : index
    %c0_20 = arith.constant 0 : index
    %26 = vector.load %arg9[%c0_19, %c0_20] : memref<1x128xf32, #tpu.memory_space<vmem>>, vector<1x128xf32>
    %27 = vector.broadcast %26 : vector<1x128xf32> to vector<16x128xf32>
    %28 = arith.addf %25, %27 : vector<16x128xf32>
    %c0_21 = arith.constant 0 : index
    %c0_22 = arith.constant 0 : index
    %29 = vector.load %arg10[%c0_21, %c0_22] : memref<16x128xf32, #tpu.memory_space<vmem>>, vector<16x128xf32>
    tpu.vector_store %arg10[%c0_21, %c0_22], %28 {strides = array<i32>} : memref<16x128xf32, #tpu.memory_space<vmem>>, vector<16x128xf32>,
    return
  }
  func.func @transform_0(%arg0: i32) -> (i32, i32) {
    %c0_i32 = arith.constant 0 : i32
    %c0_i32_0 = arith.constant 0 : i32
    return %arg0, %c0_i32 : i32, i32
  }
  func.func @transform_1(%arg0: i32) -> (i32, i32) {
    %c0_i32 = arith.constant 0 : i32
    %c0_i32_0 = arith.constant 0 : i32
    %c0_i32_1 = arith.constant 0 : i32
    return %c0_i32, %c0_i32_0 : i32, i32
  }
  func.func @transform_2(%arg0: i32) -> (i32, i32) {
    %c0_i32 = arith.constant 0 : i32
    %c0_i32_0 = arith.constant 0 : i32
    %c0_i32_1 = arith.constant 0 : i32
    return %c0_i32, %c0_i32_0 : i32, i32
  }
  func.func @transform_3(%arg0: i32) -> (i32, i32) {
    %c0_i32 = arith.constant 0 : i32
    %c0_i32_0 = arith.constant 0 : i32
    %c0_i32_1 = arith.constant 0 : i32
    return %c0_i32, %c0_i32_0 : i32, i32
  }
  func.func @transform_4(%arg0: i32) -> (i32, i32) {
    %c0_i32 = arith.constant 0 : i32
    %c0_i32_0 = arith.constant 0 : i32
    %c0_i32_1 = arith.constant 0 : i32
    return %c0_i32, %c0_i32_0 : i32, i32
  }
  func.func @transform_5(%arg0: i32) -> (i32, i32) {
    %c0_i32 = arith.constant 0 : i32
    %c0_i32_0 = arith.constant 0 : i32
    %c0_i32_1 = arith.constant 0 : i32
    return %c0_i32, %c0_i32_0 : i32, i32
  }
  func.func @transform_6(%arg0: i32) -> (i32, i32) {
    %c0_i32 = arith.constant 0 : i32
    %c0_i32_0 = arith.constant 0 : i32
    %c0_i32_1 = arith.constant 0 : i32
    return %c0_i32, %c0_i32_0 : i32, i32
  }
  func.func @transform_7(%arg0: i32) -> (i32, i32) {
    %c0_i32 = arith.constant 0 : i32
    %c0_i32_0 = arith.constant 0 : i32
    %c0_i32_1 = arith.constant 0 : i32
    return %c0_i32, %c0_i32_0 : i32, i32
  }
  func.func @transform_8(%arg0: i32) -> (i32, i32) {
    %c0_i32 = arith.constant 0 : i32
    %c0_i32_0 = arith.constant 0 : i32
    %c0_i32_1 = arith.constant 0 : i32
    return %c0_i32, %c0_i32_0 : i32, i32
  }
  func.func @transform_9(%arg0: i32) -> (i32, i32) {
    %c0_i32 = arith.constant 0 : i32
    %c0_i32_0 = arith.constant 0 : i32
    return %arg0, %c0_i32 : i32, i32
  }
}

</mosaic_0001>

<bundles_post_ra>
// kernel: tpu_custom_call.1
= control target key start
LH: loop header
LB: loop body
LE: loop exit
PB: predicated region body
PF: predicated region fallthrough
CT: control target
= control target key end

     0   :  { %14 = vsyncpa [#allocation3], 0  ;;  %s1303_s0 = inlined_call_operand.hbm [shape: bf16[16,128], index: 0, kind: input, shape index: {}]   ;;  %s1304_s1 = inlined_call_operand.hbm [shape: bf16[128,256], index: 1, kind: input, shape index: {}]   ;;  %s1305_s2 = inlined_call_operand.hbm [shape: f32[1,256], index: 2, kind: input, shape index: {}]   ;;  %s1306_s3 = inlined_call_operand.hbm [shape: bf16[256,256], index: 3, kind: input, shape index: {}]   ;;  %s1307_s4 = inlined_call_operand.vmem [shape: f32[1,256], index: 4, kind: input, shape index: {}]   ;;  %s1308_s5 = inlined_call_operand.hbm [shape: bf16[256,128], index: 5, kind: input, shape index: {}]   ;;  %s1309_s6 = inlined_call_operand.vmem [shape: f32[1,128], index: 6, kind: input, shape index: {}]   ;;  %s1310_s7 = inlined_call_operand.vmem [shape: f32[1,128], index: 7, kind: input, shape index: {}]   ;;  %s1311_s8 = inlined_call_operand.vmem [shape: f32[1,128], index: 8, kind: input, shape index: {}]   ;;  %s1312_s9 = inlined_call_operand.hbm [shape: f32[16,128], index: 9, kind: output, shape index: {}]  }
   0x1   :  { %15 = vsyncpa [#allocation6], 0 }
   0x2   :  { %16 = vsyncpa [#allocation9], 0  ;;  %s35_s11 = sshll.u32 %s1304_s1, 4  ;;  %s36_s11 = int_to_ptr.hbm [resolvable:$true] %s35_s11 }
   0x3   :  { %17 = vsyncpa [#allocation4], 0  ;;  %s1204_s12 = smov [#allocation5]   ;;  %s59_s16 = sshll.u32 %s1306_s3, 4  ;;  %s60_s16 = int_to_ptr.hbm [resolvable:$true] %s59_s16 }
   0x4   :  { %s37_s13 = sshll.u32 %s1204_s12, 4  ;;  %s1205_s17 = smov 128   ;;  %s38_s13 = int_to_ptr.vmem [resolvable:$true] %s37_s13 }
   0x5   :  { %s1206_s18 = smov 8   ;;  %s1207_s19 = smov [#allocation8]  }
   0x6   :  { %43 = dma.hbm_to_vmem [thread:$0]  %s36_s11, 2048, %s38_s13, [#allocation6], %s1205_s17, %s1205_s17, %s1206_s18  }
   0x7   :  { %s61_s20 = sshll.u32 %s1207_s19, 4  ;;  %s22_s22 = sshll.u32 %s1303_s0, 4  ;;  %s62_s20 = int_to_ptr.vmem [resolvable:$true] %s61_s20  ;;  %s23_s22 = int_to_ptr.hbm [resolvable:$true] %s22_s22 }
   0x8   :  { %67 = dma.hbm_to_vmem [thread:$0]  %s60_s16, 4096, %s62_s20, [#allocation9], %s1205_s17, %s1205_s17, %s1206_s18  }
   0x9   :  { %s1208_s3 = smov [#allocation2]   ;;  %s49_s26 = sshll.u32 %s1305_s2, 4  ;;  %s50_s26 = int_to_ptr.hbm [resolvable:$true] %s49_s26 }
   0xa   :  { %s24_s23 = sshll.u32 %s1208_s3, 4  ;;  %s1209_s27 = smov 64   ;;  %s25_s23 = int_to_ptr.vmem [resolvable:$true] %s24_s23 }
   0xb   :  { %s1210_s28 = smov 4   ;;  %s1211_s29 = smov [#allocation7]  }
   0xc   :  { %30 = dma.hbm_to_vmem [thread:$0]  %s23_s22, 128, %s25_s23, [#allocation3], %s1209_s27, %s1209_s27, %s1210_s28  }
   0xd   :  { %s51_s30 = sshll.u32 %s1211_s29, 4  ;;  %s74_s11 = sshll.u32 %s1308_s5, 4  ;;  %s52_s30 = int_to_ptr.vmem [resolvable:$true] %s51_s30  ;;  %s75_s11 = int_to_ptr.hbm [resolvable:$true] %s74_s11 }
   0xe   :  { %54 = dma.hbm_to_vmem [thread:$0]  %s50_s26, 32, %s52_s30, [#allocation6]  }
   0xf   :  { %s1212_s12 = smov [#allocation10]  }
  0x10   :  { %s76_s13 = sshll.u32 %s1212_s12, 4  ;;  %s77_s13 = int_to_ptr.vmem [resolvable:$true] %s76_s13 }
  0x11   :  { %82 = dma.hbm_to_vmem [thread:$0]  %s75_s11, 2048, %s77_s13, [#allocation9], %s1209_s27, %s1209_s27, %s1210_s28  }
  0x12   :  { %1196 = dma.done.wait [#allocation3], 128  }
  0x13   :  { %1197 = vsyncadd [#allocation3], 4294967168 }
  0x14   :  { %1198 = dma.done.wait [#allocation6], 2080  }
  0x15   :  { %1199 = vsyncadd [#allocation6], 4294965216 }
  0x16   :  { %1200 = dma.done.wait [#allocation9], 6144  }
  0x17   :  { %1201 = vsyncadd [#allocation9], 4294961152  ;;  %v772_v0 = vld [vmem:[#allocation5 + $0x70] sm:$0xf]  ;;  %v986_v1 = vld [vmem:[#allocation5 + $0x74] sm:$0xf0] }
  0x18   :  { %v985_v2 = vld [vmem:[#allocation5 + $0x74] sm:$0xf]  ;;  %v773_v3 = vor.u32 %v986_v1, %v772_v0  ;;  %v774_v4 = vld [vmem:[#allocation5 + $0x78] sm:$0xf0]  ;;  %v764_v5 = vld [vmem:[#allocation5 + $0x60] sm:$0xf] }
  0x19   :  { %v984_v6 = vld [vmem:[#allocation5 + $0x64] sm:$0xf0]  ;;  %v777_v7 = vor.u32 %v985_v2, %v774_v4  ;;  %v983_v8 = vld [vmem:[#allocation5 + $0x64] sm:$0xf]  ;;  %v766_v9 = vld [vmem:[#allocation5 + $0x68] sm:$0xf0] }
  0x1a   :  { %219 = vmatpush.bf16.msra.mxu0 %v773_v3  ;;  %v765_v10 = vor.u32 %v984_v6, %v764_v5  ;;  %v769_v11 = vor.u32 %v983_v8, %v766_v9  ;;  %v756_v12 = vld [vmem:[#allocation5 + $0x50] sm:$0xf]  ;;  %v982_v13 = vld [vmem:[#allocation5 + $0x54] sm:$0xf0]  ;;  %v981_v14 = vld [vmem:[#allocation5 + $0x54] sm:$0xf] }
  0x1b   :  { %233 = vmatpush.bf16.msra.mxu1 %v777_v7  ;;  %v758_v15 = vld [vmem:[#allocation5 + $0x58] sm:$0xf0]  ;;  %v757_v16 = vor.u32 %v982_v13, %v756_v12  ;;  %v748_v18 = vld [vmem:[#allocation5 + $0x40] sm:$0xf]  ;;  %v980_v19 = vld [vmem:[#allocation5 + $0x44] sm:$0xf0] }
  0x1c   :  { %v761_v17 = vor.u32 %v981_v14, %v758_v15  ;;  %v979_v20 = vld [vmem:[#allocation5 + $0x44] sm:$0xf]  ;;  %v750_v21 = vld [vmem:[#allocation5 + $0x48] sm:$0xf0]  ;;  %v749_v22 = vor.u32 %v980_v19, %v748_v18  ;;  %v836_v23 = vld [vmem:[#allocation8 + $0x70] sm:$0xf] }
  0x1d   :  { %v1002_v24 = vld [vmem:[#allocation8 + $0x74] sm:$0xf0]  ;;  %v900_v25 = vld [vmem:[#allocation8 + $0xf0] sm:$0xf]  ;;  %v753_v26 = vor.u32 %v979_v20, %v750_v21  ;;  %v828_v34 = vld [vmem:[#allocation8 + $0x60] sm:$0xf] }
  0x1e   :  { %220 = vmatpush.bf16.msra.mxu0 %v765_v10  ;;  %v740_v27 = vld [vmem:[#allocation5 + $0x30] sm:$0xf]  ;;  %v978_v28 = vld [vmem:[#allocation5 + $0x34] sm:$0xf0]  ;;  %v837_v29 = vor.u32 %v1002_v24, %v836_v23  ;;  %v977_v31 = vld [vmem:[#allocation5 + $0x34] sm:$0xf] }
  0x1f   :  { %234 = vmatpush.bf16.msra.mxu1 %v769_v11  ;;  %v1018_v30 = vld [vmem:[#allocation8 + $0xf4] sm:$0xf0]  ;;  %v1000_v35 = vld [vmem:[#allocation8 + $0x64] sm:$0xf0]  ;;  %v892_v36 = vld [vmem:[#allocation8 + $0xe0] sm:$0xf]  ;;  %v741_v38 = vor.u32 %v978_v28, %v740_v27 }
  0x20   :  { %v742_v32 = vld [vmem:[#allocation5 + $0x38] sm:$0xf0]  ;;  %v901_v33 = vor.u32 %v1018_v30, %v900_v25  ;;  %451 = vmatpush.bf16.msra.mxu2 %v837_v29  ;;  %v1016_v37 = vld [vmem:[#allocation8 + $0xe4] sm:$0xf0]  ;;  %v732_v39 = vld [vmem:[#allocation5 + $0x20] sm:$0xf]  ;;  %v829_v41 = vor.u32 %v1000_v35, %v828_v34 }
  0x21   :  { %v976_v40 = vld [vmem:[#allocation5 + $0x24] sm:$0xf0]  ;;  %v893_v42 = vor.u32 %v1016_v37, %v892_v36  ;;  %v745_v43 = vor.u32 %v977_v31, %v742_v32  ;;  %v975_v44 = vld [vmem:[#allocation5 + $0x24] sm:$0xf]  ;;  %v820_v45 = vld [vmem:[#allocation8 + $0x50] sm:$0xf] }
  0x22   :  { %221 = vmatpush.bf16.msra.mxu0 %v757_v16  ;;  %465 = vmatpush.bf16.msra.mxu3 %v901_v33  ;;  %v998_v46 = vld [vmem:[#allocation8 + $0x54] sm:$0xf0]  ;;  %v734_v47 = vld [vmem:[#allocation5 + $0x28] sm:$0xf0]  ;;  %v884_v48 = vld [vmem:[#allocation8 + $0xd0] sm:$0xf]  ;;  %v733_v51 = vor.u32 %v976_v40, %v732_v39 }
  0x23   :  { %235 = vmatpush.bf16.msra.mxu1 %v761_v17  ;;  %v1014_v49 = vld [vmem:[#allocation8 + $0xd4] sm:$0xf0]  ;;  %v821_v50 = vor.u32 %v998_v46, %v820_v45  ;;  %v724_v52 = vld [vmem:[#allocation5 + $0x10] sm:$0xf]  ;;  %v812_v54 = vld [vmem:[#allocation8 + $0x40] sm:$0xf]  ;;  %v737_v56 = vor.u32 %v975_v44, %v734_v47 }
  0x24   :  { %452 = vmatpush.bf16.msra.mxu2 %v829_v41  ;;  %v885_v53 = vor.u32 %v1014_v49, %v884_v48  ;;  %v996_v55 = vld [vmem:[#allocation8 + $0x44] sm:$0xf0]  ;;  %v974_v57 = vld [vmem:[#allocation5 + $0x14] sm:$0xf0]  ;;  %v876_v58 = vld [vmem:[#allocation8 + $0xc0] sm:$0xf] }
  0x25   :  { %v1012_v59 = vld [vmem:[#allocation8 + $0xc4] sm:$0xf0]  ;;  %v973_v60 = vld [vmem:[#allocation5 + $0x14] sm:$0xf]  ;;  %v726_v61 = vld [vmem:[#allocation5 + $0x18] sm:$0xf0]  ;;  %v813_v62 = vor.u32 %v996_v55, %v812_v54  ;;  %v725_v63 = vor.u32 %v974_v57, %v724_v52 }
  0x26   :  { %222 = vmatpush.bf16.msra.mxu0 %v749_v22  ;;  %466 = vmatpush.bf16.msra.mxu3 %v893_v42  ;;  %v877_v0 = vor.u32 %v1012_v59, %v876_v58  ;;  %v729_v1 = vor.u32 %v973_v60, %v726_v61  ;;  %v716_v2 = vld [vmem:[#allocation5] sm:$0xf]  ;;  %v972_v3 = vld [vmem:[#allocation5 + $0x4] sm:$0xf0]  ;;  %v971_v4 = vld [vmem:[#allocation5 + $0x4] sm:$0xf] }
  0x27   :  { %236 = vmatpush.bf16.msra.mxu1 %v753_v26  ;;  %v718_v5 = vld [vmem:[#allocation5 + $0x8] sm:$0xf0]  ;;  %v1001_v6 = vld [vmem:[#allocation8 + $0x74] sm:$0xf]  ;;  %v838_v7 = vld [vmem:[#allocation8 + $0x78] sm:$0xf0]  ;;  %v717_v10 = vor.u32 %v972_v3, %v716_v2 }
  0x28   :  { %453 = vmatpush.bf16.msra.mxu2 %v821_v50  ;;  %v1017_v8 = vld [vmem:[#allocation8 + $0xf4] sm:$0xf]  ;;  %v902_v9 = vld [vmem:[#allocation8 + $0xf8] sm:$0xf0]  ;;  %v721_v11 = vor.u32 %v971_v4, %v718_v5  ;;  %v841_v12 = vor.u32 %v1001_v6, %v838_v7  ;;  %v999_v14 = vld [vmem:[#allocation8 + $0x64] sm:$0xf] }
  0x29   :  { %v905_v13 = vor.u32 %v1017_v8, %v902_v9  ;;  %v830_v15 = vld [vmem:[#allocation8 + $0x68] sm:$0xf0]  ;;  %v970_v16 = vld [vmem:[#allocation2] sm:$0xff]  ;;  %v1015_v17 = vld [vmem:[#allocation8 + $0xe4] sm:$0xf]  ;;  %s695_s3 = sshll.u32 %s1312_s9, 4  ;;  %s696_s3 = int_to_ptr.hbm [resolvable:$true] %s695_s3 }
  0x2a   :  { %223 = vmatpush.bf16.msra.mxu0 %v741_v38  ;;  %467 = vmatpush.bf16.msra.mxu3 %v885_v53  ;;  %v894_v18 = vld [vmem:[#allocation8 + $0xe8] sm:$0xf0]  ;;  %v833_v19 = vor.u32 %v999_v14, %v830_v15  ;;  %v997_v21 = vld [vmem:[#allocation8 + $0x54] sm:$0xf]  ;;  %v822_v22 = vld [vmem:[#allocation8 + $0x58] sm:$0xf0] }
  0x2b   :  { %237 = vmatpush.bf16.msra.mxu1 %v745_v43  ;;  %v897_v20 = vor.u32 %v1015_v17, %v894_v18  ;;  %v1013_v23 = vld [vmem:[#allocation8 + $0xd4] sm:$0xf]  ;;  %v886_v24 = vld [vmem:[#allocation8 + $0xd8] sm:$0xf0]  ;;  %v825_v25 = vor.u32 %v997_v21, %v822_v22  ;;  %v995_v27 = vld [vmem:[#allocation8 + $0x44] sm:$0xf] }
  0x2c   :  { %454 = vmatpush.bf16.msra.mxu2 %v813_v62  ;;  %v889_v26 = vor.u32 %v1013_v23, %v886_v24  ;;  %v814_v28 = vld [vmem:[#allocation8 + $0x48] sm:$0xf0]  ;;  %v1011_v29 = vld [vmem:[#allocation8 + $0xc4] sm:$0xf]  ;;  %v804_v33 = vld [vmem:[#allocation8 + $0x30] sm:$0xf] }
  0x2d   :  { %v878_v30 = vld [vmem:[#allocation8 + $0xc8] sm:$0xf0]  ;;  %v817_v31 = vor.u32 %v995_v27, %v814_v28  ;;  %v994_v34 = vld [vmem:[#allocation8 + $0x34] sm:$0xf0]  ;;  %v868_v35 = vld [vmem:[#allocation8 + $0xb0] sm:$0xf] }
  0x2e   :  { %224 = vmatpush.bf16.msra.mxu0 %v733_v51  ;;  %468 = vmatpush.bf16.msra.mxu3 %v877_v0  ;;  %v881_v32 = vor.u32 %v1011_v29, %v878_v30  ;;  %v805_v36 = vor.u32 %v994_v34, %v804_v33  ;;  %v1010_v37 = vld [vmem:[#allocation8 + $0xb4] sm:$0xf0]  ;;  %v993_v38 = vld [vmem:[#allocation8 + $0x34] sm:$0xf]  ;;  %v806_v39 = vld [vmem:[#allocation8 + $0x38] sm:$0xf0] }
  0x2f   :  { %238 = vmatpush.bf16.msra.mxu1 %v737_v56  ;;  %v869_v40 = vor.u32 %v1010_v37, %v868_v35  ;;  %v809_v41 = vor.u32 %v993_v38, %v806_v39  ;;  %v1009_v42 = vld [vmem:[#allocation8 + $0xb4] sm:$0xf]  ;;  %v870_v43 = vld [vmem:[#allocation8 + $0xb8] sm:$0xf0]  ;;  %v796_v45 = vld [vmem:[#allocation8 + $0x20] sm:$0xf] }
  0x30   :  { %455 = vmatpush.bf16.msra.mxu2 %v805_v36  ;;  %v873_v44 = vor.u32 %v1009_v42, %v870_v43  ;;  %v992_v46 = vld [vmem:[#allocation8 + $0x24] sm:$0xf0]  ;;  %v860_v48 = vld [vmem:[#allocation8 + $0xa0] sm:$0xf]  ;;  %v991_v50 = vld [vmem:[#allocation8 + $0x24] sm:$0xf] }
  0x31   :  { %v797_v47 = vor.u32 %v992_v46, %v796_v45  ;;  %v1008_v49 = vld [vmem:[#allocation8 + $0xa4] sm:$0xf0]  ;;  %v798_v52 = vld [vmem:[#allocation8 + $0x28] sm:$0xf0]  ;;  %v1007_v53 = vld [vmem:[#allocation8 + $0xa4] sm:$0xf] }
  0x32   :  { %225 = vmatpush.bf16.msra.mxu0 %v725_v63  ;;  %469 = vmatpush.bf16.msra.mxu3 %v869_v40  ;;  %v861_v51 = vor.u32 %v1008_v49, %v860_v48  ;;  %v862_v54 = vld [vmem:[#allocation8 + $0xa8] sm:$0xf0]  ;;  %v801_v55 = vor.u32 %v991_v50, %v798_v52  ;;  %v788_v57 = vld [vmem:[#allocation8 + $0x10] sm:$0xf]  ;;  %v990_v58 = vld [vmem:[#allocation8 + $0x14] sm:$0xf0] }
  0x33   :  { %239 = vmatpush.bf16.msra.mxu1 %v729_v1  ;;  %v865_v56 = vor.u32 %v1007_v53, %v862_v54  ;;  %v852_v59 = vld [vmem:[#allocation8 + $0x90] sm:$0xf]  ;;  %v789_v60 = vor.u32 %v990_v58, %v788_v57  ;;  %v1006_v61 = vld [vmem:[#allocation8 + $0x94] sm:$0xf0]  ;;  %v989_v62 = vld [vmem:[#allocation8 + $0x14] sm:$0xf] }
  0x34   :  { %456 = vmatpush.bf16.msra.mxu2 %v797_v47  ;;  %v790_v63 = vld [vmem:[#allocation8 + $0x18] sm:$0xf0]  ;;  %v853_v0 = vor.u32 %v1006_v61, %v852_v59  ;;  %v1005_v2 = vld [vmem:[#allocation8 + $0x94] sm:$0xf]  ;;  %v780_v5 = vld [vmem:[#allocation8] sm:$0xf] }
  0x35   :  { %v793_v1 = vor.u32 %v989_v62, %v790_v63  ;;  %v854_v3 = vld [vmem:[#allocation8 + $0x98] sm:$0xf0]  ;;  %v988_v6 = vld [vmem:[#allocation8 + $0x4] sm:$0xf0]  ;;  %v844_v7 = vld [vmem:[#allocation8 + $0x80] sm:$0xf] }
  0x36   :  { %226 = vmatpush.bf16.msra.mxu0 %v717_v10  ;;  %470 = vmatpush.bf16.msra.mxu3 %v861_v51  ;;  %v857_v4 = vor.u32 %v1005_v2, %v854_v3  ;;  %v781_v8 = vor.u32 %v988_v6, %v780_v5  ;;  %v1004_v9 = vld [vmem:[#allocation8 + $0x84] sm:$0xf0]  ;;  %v987_v10 = vld [vmem:[#allocation8 + $0x4] sm:$0xf]  ;;  %v846_v15 = vld [vmem:[#allocation8 + $0x88] sm:$0xf0] }
  0x37   :  { %240 = vmatpush.bf16.msra.mxu1 %v721_v11  ;;  %v782_v11 = vld [vmem:[#allocation8 + $0x8] sm:$0xf0]  ;;  %v1003_v14 = vld [vmem:[#allocation8 + $0x84] sm:$0xf]  ;;  %v1034_v17 = vld [vmem:[#allocation10 + $0x78] sm:$0xff] }
  0x38   :  { %457 = vmatpush.bf16.msra.mxu2 %v789_v60  ;;  %v1026_v18 = vld [vmem:[#allocation10 + $0x38] sm:$0xff]  ;;  %v1032_v21 = vld [vmem:[#allocation10 + $0x68] sm:$0xff]  ;;  %v1031_v22 = vld [vmem:[#allocation10 + $0x60] sm:$0xff] }
  0x39   :  { %227 = vmatmul.bf16.vlgmr.msra.gmra.mxu0 %v970_v16  ;;  %v127_v23 = vld [vmem:[#allocation7] sm:$0x3]  ;;  %v1024_v40 = vld [vmem:[#allocation10 + $0x28] sm:$0xff]  ;;  %v1023_v42 = vld [vmem:[#allocation10 + $0x20] sm:$0xff] }
  0x3a   :  { %479 = vmatpush.bf16.msrb.mxu0 %v841_v12  ;;  %241 = vmatmul.bf16.vlgmr.msra.gmra.mxu1 %v970_v16  ;;  %v845_v12 = vor.u32 %v1004_v9, %v844_v7  ;;  %v849_v16 = vor.u32 %v1003_v14, %v846_v15  ;;  %v130_v27 = vperm.slane %v127_v23, 1  ;;  %v1029_v43 = vld [vmem:[#allocation10 + $0x50] sm:$0xff]  ;;  %v1028_v45 = vld [vmem:[#allocation10 + $0x48] sm:$0xff]  ;;  %v1027_v47 = vld [vmem:[#allocation10 + $0x40] sm:$0xff] }
  0x3b   :  { %493 = vmatpush.bf16.msrb.mxu1 %v905_v13  ;;  %471 = vmatpush.bf16.msra.mxu3 %v853_v0  ;;  %v785_v13 = vor.u32 %v987_v10, %v782_v11  ;;  %v1021_v46 = vld [vmem:[#allocation10 + $0x10] sm:$0xff]  ;;  %v1020_v48 = vld [vmem:[#allocation10 + $0x8] sm:$0xff]  ;;  %v1019_v49 = vld [vmem:[#allocation10] sm:$0xff] }
  0x3c   :  { %458 = vmatpush.bf16.msra.mxu2 %v781_v8  ;;  %v285_v50 = vld [vmem:[%s1307_s4] sm:$0x3] }
  0x3d   :  { %v288_v52 = vperm.slane %v285_v50, 1  ;;  %v1045_v11 = vld [vmem:[%s1309_s6] ss:$0 sm:$0xff]  ;;  %s1213_s6 = smov [#allocation11]  }
  0x3e   :  { %480 = vmatpush.bf16.msrb.mxu0 %v833_v19  ;;  %v1033_v19 = vld [vmem:[#allocation10 + $0x70] sm:$0xff]  ;;  %s693_s21 = sshll.u32 %s1213_s6, 4  ;;  %s694_s21 = int_to_ptr.vmem [resolvable:$true] %s693_s21 }
  0x3f   :  { %494 = vmatpush.bf16.msrb.mxu1 %v897_v20  ;;  %472 = vmatpush.bf16.msra.mxu3 %v845_v12  ;;  %v1025_v20 = vld [vmem:[#allocation10 + $0x30] sm:$0xff] }
  0x40   :  { %645 = vmatpush.bf16.msrb.mxu2 %v1026_v18 }
  0x42   :  { %481 = vmatpush.bf16.msrb.mxu0 %v825_v25 }
  0x43   :  { %495 = vmatpush.bf16.msrb.mxu1 %v889_v26  ;;  %659 = vmatpush.bf16.msrb.mxu3 %v1034_v17  ;;  %v129_v26 = vperm.slane %v127_v23, 0  ;;  %v1046_v17 = vld [vmem:[%s1310_s7] ss:$0 sm:$0xff] }
  0x44   :  { %646 = vmatpush.bf16.msrb.mxu2 %v1025_v20  ;;  %v1047_v20 = vld [vmem:[%s1311_s8] ss:$0 sm:$0xff] }
  0x46   :  { %482 = vmatpush.bf16.msrb.mxu0 %v817_v31 }
  0x47   :  { %496 = vmatpush.bf16.msrb.mxu1 %v881_v32  ;;  %660 = vmatpush.bf16.msrb.mxu3 %v1033_v19 }
  0x48   :  { %647 = vmatpush.bf16.msrb.mxu2 %v1024_v40 }
  0x4a   :  { %483 = vmatpush.bf16.msrb.mxu0 %v809_v41  ;;  %v1030_v41 = vld [vmem:[#allocation10 + $0x58] sm:$0xff] }
  0x4b   :  { %497 = vmatpush.bf16.msrb.mxu1 %v873_v44  ;;  %661 = vmatpush.bf16.msrb.mxu3 %v1032_v21  ;;  %v1022_v44 = vld [vmem:[#allocation10 + $0x18] sm:$0xff] }
  0x4c   :  { %648 = vmatpush.bf16.msrb.mxu2 %v1023_v42 }
  0x4e   :  { %484 = vmatpush.bf16.msrb.mxu0 %v801_v55 }
  0x4f   :  { %498 = vmatpush.bf16.msrb.mxu1 %v865_v56  ;;  %662 = vmatpush.bf16.msrb.mxu3 %v1031_v22  ;;  %v287_v56 = vperm.slane %v285_v50, 0 }
  0x50   :  { %649 = vmatpush.bf16.msrb.mxu2 %v1022_v44 }
  0x52   :  { %485 = vmatpush.bf16.msrb.mxu0 %v793_v1 }
  0x53   :  { %499 = vmatpush.bf16.msrb.mxu1 %v857_v4  ;;  %663 = vmatpush.bf16.msrb.mxu3 %v1030_v41 }
  0x54   :  { %650 = vmatpush.bf16.msrb.mxu2 %v1021_v46 }
  0x56   :  { %486 = vmatpush.bf16.msrb.mxu0 %v785_v13 }
  0x57   :  { %500 = vmatpush.bf16.msrb.mxu1 %v849_v16  ;;  %664 = vmatpush.bf16.msrb.mxu3 %v1029_v43 }
  0x58   :  { %651 = vmatpush.bf16.msrb.mxu2 %v1020_v48 }
  0x5b   :  { %665 = vmatpush.bf16.msrb.mxu3 %v1028_v45 }
  0x5c   :  { %652 = vmatpush.bf16.msrb.mxu2 %v1019_v49 }
  0x5f   :  { %666 = vmatpush.bf16.msrb.mxu3 %v1027_v47 }
  0xb6   :  { %v228_v24 = vpop.f32.mrf.mxu0 }
  0xb7   :  { %v242_v25 = vpop.f32.mrf.mxu1  ;;  %v229_v28 = vadd.f32 %v228_v24, %v129_v26 }
  0xb8   :  { %v243_v29 = vadd.f32 %v242_v25, %v130_v27 }
  0xb9   :  { %v247_v34 = vmax.f32 %v229_v28, 0.0 }
  0xba   :  { %v248_v36 = vmax.f32 %v243_v29, 0.0 }
  0xbe   :  { %v230_v30 = vpop.f32.mrf.mxu0 }
  0xbf   :  { %v231_v31 = vadd.f32 %v230_v30, %v129_v26  ;;  %v244_v32 = vpop.f32.mrf.mxu1 }
  0xc0   :  { %v245_v33 = vadd.f32 %v244_v32, %v130_v27 }
  0xc1   :  { %v249_v35 = vmax.f32 %v231_v31, 0.0 }
  0xc2   :  { %v250_v37 = vmax.f32 %v245_v33, 0.0 }
  0xc3   :  { %v251_v38 = vpack.c.bf16 %v249_v35, %v247_v34 }
  0xc4   :  { %v252_v39 = vpack.c.bf16 %v250_v37, %v248_v36 }
  0xc5   :  { %459 = vmatmul.bf16.vlgmr.msra.gmra.mxu2 %v251_v38  ;;  %487 = vmatmul.bf16.vlgmr.msrb.gmra.mxu0 %v251_v38 }
  0xc6   :  { %473 = vmatmul.bf16.vlgmr.msra.gmra.mxu3 %v252_v39  ;;  %501 = vmatmul.bf16.vlgmr.msrb.gmra.mxu1 %v252_v39 }
 0x142   :  { %v488_v51 = vpop.f32.mrf.mxu0 }
 0x143   :  { %v502_v53 = vpop.f32.mrf.mxu1  ;;  %v489_v54 = vadd.f32 %v488_v51, %v288_v52 }
 0x145   :  { %v503_v59 = vadd.f32 %v502_v53, %v489_v54 }
 0x147   :  { %v508_v0 = vmax.f32 %v503_v59, 0.0 }
 0x148   :  { %v460_v55 = vpop.f32.mrf.mxu2 }
 0x149   :  { %v474_v57 = vpop.f32.mrf.mxu3  ;;  %v461_v62 = vadd.f32 %v460_v55, %v287_v56 }
 0x14a   :  { %v490_v58 = vpop.f32.mrf.mxu0 }
 0x14b   :  { %v491_v60 = vadd.f32 %v490_v58, %v288_v52  ;;  %v504_v61 = vpop.f32.mrf.mxu1  ;;  %v475_v3 = vadd.f32 %v474_v57, %v461_v62 }
 0x14d   :  { %v505_v63 = vadd.f32 %v504_v61, %v491_v60  ;;  %v507_v8 = vmax.f32 %v475_v3, 0.0 }
 0x14f   :  { %v510_v1 = vmax.f32 %v505_v63, 0.0 }
 0x150   :  { %v462_v2 = vpop.f32.mrf.mxu2 }
 0x151   :  { %v512_v4 = vpack.c.bf16 %v510_v1, %v508_v0  ;;  %v463_v5 = vadd.f32 %v462_v2, %v287_v56  ;;  %v476_v6 = vpop.f32.mrf.mxu3 }
 0x153   :  { %v477_v7 = vadd.f32 %v476_v6, %v463_v5  ;;  %667 = vmatmul.bf16.vlgmr.msrb.gmra.mxu3 %v512_v4 }
 0x155   :  { %v509_v9 = vmax.f32 %v477_v7, 0.0 }
 0x157   :  { %v511_v10 = vpack.c.bf16 %v509_v9, %v507_v8 }
 0x159   :  { %653 = vmatmul.bf16.vlgmr.msrb.gmra.mxu2 %v511_v10 }
 0x1d6   :  { %v668_v12 = vpop.f32.mrf.mxu3 }
 0x1dc   :  { %v654_v13 = vpop.f32.mrf.mxu2 }
 0x1dd   :  { %v655_v14 = vadd.f32 %v1045_v11, %v654_v13 }
 0x1de   :  { %v670_v19 = vpop.f32.mrf.mxu3 }
 0x1df   :  { %v669_v15 = vadd.f32 %v668_v12, %v655_v14 }
 0x1e1   :  { %1048 = vtanh.f32 %v669_v15 }
 0x1e4   :  { %v656_v16 = vpop.f32.mrf.mxu2 }
 0x1e5   :  { %v657_v18 = vadd.f32 %v1045_v11, %v656_v16 }
 0x1e7   :  { %v1049_v21 = vpop.eup %1048  ;;  %v671_v22 = vadd.f32 %v670_v19, %v657_v18 }
 0x1e8   :  { %v679_v23 = vmul.f32 %v1049_v21, %v1046_v17 }
 0x1e9   :  { %1050 = vtanh.f32 %v671_v22 }
 0x1ea   :  { %v685_v24 = vadd.f32 %v1047_v20, %v679_v23 }
 0x1ec   :  { %687 = vst [vmem:[#allocation11] sm:$0xff] %v685_v24 }
 0x1ef   :  { %v1051_v25 = vpop.eup %1050 }
 0x1f0   :  { %v680_v26 = vmul.f32 %v1051_v25, %v1046_v17 }
 0x1f2   :  { %v686_v27 = vadd.f32 %v1047_v20, %v680_v26 }
 0x1f4   :  { %688 = vst [vmem:[#allocation11 + $0x8] sm:$0xff] %v686_v27 }
 0x1f5   :  { %701 = dma.vmem_to_hbm [thread:$0]  %s694_s21, 256, %s696_s3, [#allocation4], %s1205_s17, %s1205_s17, %s1206_s18  }
 0x1f6   :  { %1202 = dma.done.wait [#allocation4], 256  }
 0x1f7   :  { %1203 = vsyncadd [#allocation4], 4294967040 }
 0x1f8   :  { %706 = vsyncpa [#allocation3], 1 }
 0x1f9   :  { %707 = vsyncpa [#allocation6], 1 }
 0x1fa   :  { %708 = vsyncpa [#allocation9], 1 }
 0x1fb   :  { %709 = vsyncpa [#allocation4], 1 }

</bundles_post_ra>
